<compile_context>
chip_gen: v7x
topology: tpu7x:2x2x1
jax: 0.10.0
libtpu: 0.0.40
codegen_flags: <defaults>
</compile_context>

<pallas_src>
import jax
import jax.numpy as jnp
from jax.experimental import pallas as pl
from jax.experimental.pallas import tpu as pltpu


def _round_up(x, m):
    return ((x + m - 1) // m) * m


def mlp_kernel(x_ref, w1_ref, b1_ref, w2_ref, b2_ref, o_ref):
    n_classes = o_ref.shape[-1]                      # 10 (static)

    # fc1 + ReLU: cast the streamed f32 x tile to bf16 in-kernel (VPU slack),
    # MXU matmul with f32 accumulation.
    x = x_ref[...].astype(jnp.bfloat16)
    h = jnp.dot(x, w1_ref[...], preferred_element_type=jnp.float32)
    h = jnp.maximum(h + b1_ref[...], 0.0)            # b1 [1,128] broadcasts over rows

    # fc2 on a 128-lane zero-padded resident W2 tile (full MXU tile), then keep
    # only the 10 real classes before the softmax.
    logits = jnp.dot(h.astype(w2_ref.dtype), w2_ref[...],
                     preferred_element_type=jnp.float32)
    logits = logits[:, :n_classes] + b2_ref[...]     # b2 [1,10] broadcasts

    # exact f32 softmax over the 10 classes
    m = jnp.max(logits, axis=-1, keepdims=True)
    e = jnp.exp(logits - m)
    denom = jnp.sum(e, axis=-1, keepdims=True)
    inv = pl.reciprocal(denom, approx=False)         # exact; mem-bound kernel
    o_ref[...] = (e * inv).astype(o_ref.dtype)       # narrow (tb, 10) store


def mlp_forward(x, w1_t, b1, w2_t, b2, *, tb=1024, core_parallel=False):
    """x: [B, 784] f32 (or bf16), w1_t: [784, 128], b1: [1, 128],
    w2_t: [128, 10], b2: [1, 10].  Returns [B, 10] f32 softmax probabilities."""
    B, K = x.shape
    H = w1_t.shape[1]              # 128
    N = w2_t.shape[1]              # 10
    NP = _round_up(N, 128)         # 128 — MXU-friendly padded fc2 width

    # Batch tile: block == full dim is always legal; otherwise the default tb
    # is a multiple of 8 so the (8,128) constraint is satisfied. No batch pad:
    # Pallas masks the ragged last block.
    tb = min(tb, B)
    grid = (pl.cdiv(B, tb),)

    # Tiny resident weights: cast/pad once in the wrapper (negligible traffic).
    w1_bf16 = w1_t.astype(jnp.bfloat16)
    w2_p = jnp.zeros((H, NP), jnp.bfloat16).at[:, :N].set(w2_t.astype(jnp.bfloat16))
    b1_f32 = b1.astype(jnp.float32).reshape(1, H)
    b2_f32 = b2.astype(jnp.float32).reshape(1, N)

    cost = pl.CostEstimate(
        flops=2 * B * (K * H + H * NP),
        transcendentals=B * N,
        bytes_accessed=(x.size * x.dtype.itemsize
                        + w1_bf16.size * 2 + w2_p.size * 2
                        + b1_f32.size * 4 + b2_f32.size * 4
                        + B * N * 4),
    )

    dim_sem = (pltpu.CORE_PARALLEL,) if core_parallel else ("parallel",)

    out = pl.pallas_call(
        mlp_kernel,
        out_shape=jax.ShapeDtypeStruct((B, N), jnp.float32),
        grid=grid,
        in_specs=[
            pl.BlockSpec((tb, K), lambda i: (i, 0)),     # x tile, pipelined
            pl.BlockSpec((K, H), lambda i: (0, 0)),      # W1 resident (bf16)
            pl.BlockSpec((1, H), lambda i: (0, 0)),      # b1 resident (f32)
            pl.BlockSpec((H, NP), lambda i: (0, 0)),     # W2 padded, resident (bf16)
            pl.BlockSpec((1, N), lambda i: (0, 0)),      # b2 resident (f32)
        ],
        out_specs=pl.BlockSpec((tb, N), lambda i: (i, 0)),   # narrow lane store
        compiler_params=pltpu.CompilerParams(
            dimension_semantics=dim_sem,
        ),
        cost_estimate=cost,
    )(x, w1_bf16, b1_f32, w2_p, b2_f32)

    return out


def init_params(key):
    """Deterministic init mirroring nn.Linear shapes (weights stored transposed)."""
    k1, k2, k3, k4 = jax.random.split(key, 4)
    in1, out1 = 784, 128
    in2, out2 = 128, 10
    # PyTorch default init: U(-1/sqrt(fan_in), 1/sqrt(fan_in))
    lim1 = 1.0 / jnp.sqrt(jnp.float32(in1))
    lim2 = 1.0 / jnp.sqrt(jnp.float32(in2))
    w1_t = jax.random.uniform(k1, (in1, out1), jnp.float32, -lim1, lim1)
    b1 = jax.random.uniform(k2, (1, out1), jnp.float32, -lim1, lim1)
    w2_t = jax.random.uniform(k3, (in2, out2), jnp.float32, -lim2, lim2)
    b2 = jax.random.uniform(k4, (1, out2), jnp.float32, -lim2, lim2)
    return w1_t, b1, w2_t, b2


if __name__ == "__main__":
    key = jax.random.PRNGKey(0)
    kx, kp = jax.random.split(key)

    B = 8
    x = jax.random.normal(kx, (B, 784), jnp.float32)
    w1_t, b1, w2_t, b2 = init_params(kp)

    out = mlp_forward(x, w1_t, b1, w2_t, b2)
    out = jax.block_until_ready(out)

    # sanity: shape and softmax rows sum to 1 (softmax is exact f32 in-kernel)
    assert out.shape == (B, 10)
    row_sums = jnp.sum(out, axis=1)
    assert jnp.allclose(row_sums, jnp.ones((B,), jnp.float32), atol=1e-5)

    # tight reference: same bf16 casts as the kernel, f32 accumulation
    xb = x.astype(jnp.bfloat16)
    w1b = w1_t.astype(jnp.bfloat16)
    ref_h = jnp.maximum(
        jnp.dot(xb, w1b, preferred_element_type=jnp.float32) + b1, 0.0)
    ref_logits = jnp.dot(ref_h.astype(jnp.bfloat16), w2_t.astype(jnp.bfloat16),
                         preferred_element_type=jnp.float32) + b2
    ref_bf16 = jax.nn.softmax(ref_logits, axis=1)
    assert jnp.allclose(out, ref_bf16, atol=5e-3, rtol=5e-3)

    # loose semantic check against the pure-f32 PyTorch-equivalent forward
    ref_f32 = jax.nn.softmax(
        jnp.maximum(x @ w1_t + b1, 0.0) @ w2_t + b2, axis=1)
    assert jnp.allclose(out, ref_f32, atol=3e-2)

    print("KERNEL_OK")
</pallas_src>

<mosaic_0001>
module attributes {stable_mosaic.version = 11 : i64} {
  func.func @mlp_kernel(%arg0: i32, %arg1: memref<8x784xf32, #tpu.memory_space<vmem>>, %arg2: memref<784x128xbf16, #tpu.memory_space<vmem>>, %arg3: memref<1x128xf32, #tpu.memory_space<vmem>>, %arg4: memref<128x128xbf16, #tpu.memory_space<vmem>>, %arg5: memref<1x10xf32, #tpu.memory_space<vmem>>, %arg6: memref<8x10xf32, #tpu.memory_space<vmem>>) attributes {dimension_semantics = [#tpu.dimension_semantics<parallel>], iteration_bounds = array<i64: 1>, scalar_prefetch = 0 : i64, scratch_operands = 0 : i64, tpu.core_type = #tpu.core_type<tc>, window_params = [{transform_indices = @transform_0, window_bounds = array<i64: 8, 784>}, {pipeline_mode = #tpu.pipeline_mode<synchronous>, transform_indices = @transform_1, window_bounds = array<i64: 784, 128>}, {pipeline_mode = #tpu.pipeline_mode<synchronous>, transform_indices = @transform_2, window_bounds = array<i64: 1, 128>}, {pipeline_mode = #tpu.pipeline_mode<synchronous>, transform_indices = @transform_3, window_bounds = array<i64: 128, 128>}, {pipeline_mode = #tpu.pipeline_mode<synchronous>, transform_indices = @transform_4, window_bounds = array<i64: 1, 10>}, {transform_indices = @transform_5, window_bounds = array<i64: 8, 10>}]} {
    %c0 = arith.constant 0 : index
    %c0_0 = arith.constant 0 : index
    %0 = vector.load %arg1[%c0, %c0_0] : memref<8x784xf32, #tpu.memory_space<vmem>>, vector<8x784xf32>
    %1 = arith.truncf %0 : vector<8x784xf32> to vector<8x784xbf16>
    %c0_1 = arith.constant 0 : index
    %c0_2 = arith.constant 0 : index
    %2 = vector.load %arg2[%c0_1, %c0_2] : memref<784x128xbf16, #tpu.memory_space<vmem>>, vector<784x128xbf16>
    %cst = arith.constant dense<0.000000e+00> : vector<8x128xf32>
    %3 = tpu.matmul %1, %2, %cst {dimension_numbers = #tpu.dot_dimension_numbers<[1], [0], [0], [1], [0, 0, 1, 1], [], []>} : vector<8x784xbf16>, vector<784x128xbf16>, vector<8x128xf32> -> vector<8x128xf32>
    %c0_3 = arith.constant 0 : index
    %c0_4 = arith.constant 0 : index
    %4 = vector.load %arg3[%c0_3, %c0_4] : memref<1x128xf32, #tpu.memory_space<vmem>>, vector<1x128xf32>
    %5 = vector.broadcast %4 : vector<1x128xf32> to vector<8x128xf32>
    %6 = arith.addf %3, %5 : vector<8x128xf32>
    %cst_5 = arith.constant 0.000000e+00 : f32
    %7 = vector.broadcast %cst_5 : f32 to vector<8x128xf32>
    %8 = arith.maximumf %6, %7 : vector<8x128xf32>
    %9 = arith.truncf %8 : vector<8x128xf32> to vector<8x128xbf16>
    %c0_6 = arith.constant 0 : index
    %c0_7 = arith.constant 0 : index
    %10 = vector.load %arg4[%c0_6, %c0_7] : memref<128x128xbf16, #tpu.memory_space<vmem>>, vector<128x128xbf16>
    %cst_8 = arith.constant dense<0.000000e+00> : vector<8x128xf32>
    %11 = tpu.matmul %9, %10, %cst_8 {dimension_numbers = #tpu.dot_dimension_numbers<[1], [0], [0], [1], [0, 0, 1, 1], [], []>} : vector<8x128xbf16>, vector<128x128xbf16>, vector<8x128xf32> -> vector<8x128xf32>
    %12 = vector.extract_strided_slice %11 {offsets = [0, 0], sizes = [8, 10], strides = [1, 1]} : vector<8x128xf32> to vector<8x10xf32>
    %c0_9 = arith.constant 0 : index
    %c0_10 = arith.constant 0 : index
    %13 = vector.load %arg5[%c0_9, %c0_10] : memref<1x10xf32, #tpu.memory_space<vmem>>, vector<1x10xf32>
    %14 = vector.broadcast %13 : vector<1x10xf32> to vector<8x10xf32>
    %15 = arith.addf %12, %14 : vector<8x10xf32>
    %cst_11 = arith.constant dense<0xFF800000> : vector<8xf32>
    %16 = vector.multi_reduction <maximumf>, %15, %cst_11 [1] : vector<8x10xf32> to vector<8xf32>
    %17 = vector.shape_cast %16 : vector<8xf32> to vector<8x1xf32>
    %18 = vector.broadcast %17 : vector<8x1xf32> to vector<8x10xf32>
    %19 = arith.subf %15, %18 : vector<8x10xf32>
    %20 = math.exp %19 : vector<8x10xf32>
    %cst_12 = arith.constant dense<0.000000e+00> : vector<8xf32>
    %21 = vector.multi_reduction <add>, %20, %cst_12 [1] : vector<8x10xf32> to vector<8xf32>
    %22 = vector.shape_cast %21 : vector<8xf32> to vector<8x1xf32>
    %23 = tpu.reciprocal %22 : vector<8x1xf32> -> vector<8x1xf32>
    %24 = vector.broadcast %23 : vector<8x1xf32> to vector<8x10xf32>
    %25 = arith.mulf %20, %24 : vector<8x10xf32>
    %c0_13 = arith.constant 0 : index
    %c0_14 = arith.constant 0 : index
    %26 = vector.load %arg6[%c0_13, %c0_14] : memref<8x10xf32, #tpu.memory_space<vmem>>, vector<8x10xf32>
    tpu.vector_store %arg6[%c0_13, %c0_14], %25 {strides = array<i32>} : memref<8x10xf32, #tpu.memory_space<vmem>>, vector<8x10xf32>,
    return
  }
  func.func @transform_0(%arg0: i32) -> (i32, i32) {
    %c0_i32 = arith.constant 0 : i32
    %c0_i32_0 = arith.constant 0 : i32
    return %arg0, %c0_i32 : i32, i32
  }
  func.func @transform_1(%arg0: i32) -> (i32, i32) {
    %c0_i32 = arith.constant 0 : i32
    %c0_i32_0 = arith.constant 0 : i32
    %c0_i32_1 = arith.constant 0 : i32
    return %c0_i32, %c0_i32_0 : i32, i32
  }
  func.func @transform_2(%arg0: i32) -> (i32, i32) {
    %c0_i32 = arith.constant 0 : i32
    %c0_i32_0 = arith.constant 0 : i32
    %c0_i32_1 = arith.constant 0 : i32
    return %c0_i32, %c0_i32_0 : i32, i32
  }
  func.func @transform_3(%arg0: i32) -> (i32, i32) {
    %c0_i32 = arith.constant 0 : i32
    %c0_i32_0 = arith.constant 0 : i32
    %c0_i32_1 = arith.constant 0 : i32
    return %c0_i32, %c0_i32_0 : i32, i32
  }
  func.func @transform_4(%arg0: i32) -> (i32, i32) {
    %c0_i32 = arith.constant 0 : i32
    %c0_i32_0 = arith.constant 0 : i32
    %c0_i32_1 = arith.constant 0 : i32
    return %c0_i32, %c0_i32_0 : i32, i32
  }
  func.func @transform_5(%arg0: i32) -> (i32, i32) {
    %c0_i32 = arith.constant 0 : i32
    %c0_i32_0 = arith.constant 0 : i32
    return %arg0, %c0_i32 : i32, i32
  }
}

</mosaic_0001>

<bundles_post_ra>
// kernel: tpu_custom_call.1
= control target key start
LH: loop header
LB: loop body
LE: loop exit
PB: predicated region body
PF: predicated region fallthrough
CT: control target
= control target key end

     0   :  { %10 = vsyncpa [#allocation3], 0  ;;  %s1221_s0 = inlined_call_operand.hbm [shape: f32[8,784], index: 0, kind: input, shape index: {}]   ;;  %s1222_s1 = inlined_call_operand.hbm [shape: bf16[784,128], index: 1, kind: input, shape index: {}]   ;;  %s1223_s2 = inlined_call_operand.vmem [shape: f32[1,128], index: 2, kind: input, shape index: {}]   ;;  %s1224_s3 = inlined_call_operand.hbm [shape: bf16[128,128], index: 3, kind: input, shape index: {}]   ;;  %s1225_s4 = inlined_call_operand.vmem [shape: f32[1,10], index: 4, kind: input, shape index: {}]   ;;  %s1226_s5 = inlined_call_operand.hbm [shape: f32[8,10], index: 5, kind: output, shape index: {}]  }
   0x1   :  { %11 = vsyncpa [#allocation6], 0 }
   0x2   :  { %12 = vsyncpa [#allocation4], 0  ;;  %s1107_s18 = smov [#allocation5]   ;;  %s1013_s22 = scalar_lea.hbm %s1222_s1, 6272 }
   0x3   :  { %s28_s19 = sshll.u32 %s1107_s18, 4  ;;  %p1014_p0 = scmp.ne.s32.totalorder %s1222_s1, %s1013_s22  ;;  %s29_s19 = int_to_ptr.vmem [resolvable:$true] %s28_s19 }
   0x4   :  { %p1017_p1 = scmp.lt.u32.totalorder %s1013_s22, %s1222_s1 }
   0x6   :  { %p1019_p2 = pnand %p1017_p1, %p1014_p0 }
   0x8   :  { %1022 = shalt.err (!%p1019_p2)
}
   0x9   :  { %s1023_s27 = scalar_lea.vmem %s29_s19, 6272  ;;  %p1028_p4 = scmp.lt.s32.totalorder %s29_s19, %s29_s19 }
   0xa   :  { %p1024_p3 = scmp.ne.s32.totalorder %s29_s19, %s1023_s27  ;;  %p1029_p5 = scmp.lt.s32.totalorder %s1023_s27, %s1023_s27 }
   0xc   :  { %p1030_p6 = por %p1029_p5, %p1028_p4 }
   0xe   :  { %p1031_p7 = pnand %p1030_p6, %p1024_p3 }
  0x10   :  { %1034 = shalt.err (!%p1031_p7)
}
  0x11   :  { %s1108_s28 = smov 64   ;;  %s1109_s29 = smov 4  }
  0x12   :  { %34 = dma.hbm_to_vmem [thread:$0]  %s1222_s1, 6272, %s29_s19, [#allocation6], %s1108_s28, %s1108_s28, %s1109_s29  }
  0x13   :  { %s1110_s7 = smov [#allocation2]   ;;  %s1111_s9 = smov [#allocation7]  }
  0x14   :  { %s19_s8 = sshll.u32 %s1110_s7, 4  ;;  %s42_s10 = sshll.u32 %s1111_s9, 4  ;;  %s20_s8 = int_to_ptr.vmem [resolvable:$true] %s19_s8  ;;  %s43_s10 = int_to_ptr.vmem [resolvable:$true] %s42_s10 }
  0x15   :  { %s1035_s13 = scalar_lea.hbm %s1221_s0, 896 }
  0x16   :  { %p1036_p8 = scmp.ne.s32.totalorder %s1221_s0, %s1035_s13  ;;  %p1039_p9 = scmp.lt.u32.totalorder %s1035_s13, %s1221_s0 }
  0x18   :  { %p1041_p10 = pnand %p1039_p9, %p1036_p8 }
  0x1a   :  { %1044 = shalt.err (!%p1041_p10)
}
  0x1b   :  { %s1045_s1 = scalar_lea.vmem %s20_s8, 896  ;;  %p1050_p12 = scmp.lt.s32.totalorder %s20_s8, %s20_s8 }
  0x1c   :  { %p1046_p11 = scmp.ne.s32.totalorder %s20_s8, %s1045_s1  ;;  %p1051_p13 = scmp.lt.s32.totalorder %s1045_s1, %s1045_s1 }
  0x1e   :  { %p1052_p0 = por %p1051_p13, %p1050_p12 }
  0x20   :  { %p1053_p1 = pnand %p1052_p0, %p1046_p11 }
  0x22   :  { %1056 = shalt.err (!%p1053_p1)
}
  0x23   :  { %22 = dma.hbm_to_vmem [thread:$0]  %s1221_s0, 896, %s20_s8, [#allocation3]  }
  0x24   :  { %s1057_s22 = scalar_lea.hbm %s1224_s3, 1024 }
  0x25   :  { %p1058_p2 = scmp.ne.s32.totalorder %s1224_s3, %s1057_s22  ;;  %p1061_p3 = scmp.lt.u32.totalorder %s1057_s22, %s1224_s3 }
  0x27   :  { %p1063_p4 = pnand %p1061_p3, %p1058_p2 }
  0x29   :  { %1066 = shalt.err (!%p1063_p4)
}
  0x2a   :  { %s1067_s27 = scalar_lea.vmem %s43_s10, 1024  ;;  %p1072_p6 = scmp.lt.s32.totalorder %s43_s10, %s43_s10 }
  0x2b   :  { %p1068_p5 = scmp.ne.s32.totalorder %s43_s10, %s1067_s27  ;;  %p1073_p7 = scmp.lt.s32.totalorder %s1067_s27, %s1067_s27 }
  0x2d   :  { %p1074_p8 = por %p1073_p7, %p1072_p6 }
  0x2f   :  { %p1075_p9 = pnand %p1074_p8, %p1068_p5 }
  0x31   :  { %1078 = shalt.err (!%p1075_p9)
}
  0x32   :  { %48 = dma.hbm_to_vmem [thread:$0]  %s1224_s3, 1024, %s43_s10, [#allocation6], %s1108_s28, %s1108_s28, %s1109_s29  }
  0x33   :  { %1101 = dma.done.wait [#allocation3], 896  }
  0x34   :  { %1102 = vsyncadd [#allocation3], 4294966400 }
  0x35   :  { %1103 = dma.done.wait [#allocation6], 7296  }
  0x36   :  { %1104 = vsyncadd [#allocation6], 4294960000  ;;  %v952_v0 = vld [vmem:[#allocation5 + $0x40] sm:$0xff]   ;;  %v956_v4 = vld [vmem:[#allocation5 + $0x48] sm:$0xff]   ;;  %v1112_v44 = vmov 0.0   ;;  %vm1113_vm0 = vmmov 0  }
  0x37   :  { %v953_v1 = vld [vmem:[#allocation5] sm:$0xff]   ;;  %841 = vmatprep.subr.bf16.mxu0 %v952_v0  ;;  %v957_v5 = vld [vmem:[#allocation5 + $0x8] sm:$0xff]   ;;  %v960_v8 = vld [vmem:[#allocation5 + $0x50] sm:$0xff]   ;;  %vm474_vm1 = vcmask 130048   ;;  %vm752_vm2 = vcmask 80896  }
  0x38   :  { %v954_v2 = vld [vmem:[#allocation5 + $0xc0] sm:$0xff]   ;;  %842 = vmatpush3.bf16.msra.mxu0 %v953_v1  ;;  %v958_v6 = vld [vmem:[#allocation5 + $0xc8] sm:$0xff]   ;;  %v961_v9 = vld [vmem:[#allocation5 + $0x10] sm:$0xff]  }
  0x39   :  { %v955_v3 = vld [vmem:[#allocation5 + $0x80] sm:$0xff]   ;;  %863 = vmatprep.subr.bf16.mxu1 %v954_v2  ;;  %843 = vmatprep.subr.bf16.mxu0 %v956_v4  ;;  %v959_v7 = vld [vmem:[#allocation5 + $0x88] sm:$0xff]   ;;  %v962_v10 = vld [vmem:[#allocation5 + $0xd0] sm:$0xff]  }
  0x3a   :  { %864 = vmatpush3.bf16.msra.mxu1 %v955_v3  ;;  %v963_v11 = vld [vmem:[#allocation5 + $0x90] sm:$0xff]   ;;  %v964_v12 = vld [vmem:[#allocation5 + $0x58] sm:$0xff]   ;;  %v968_v16 = vld [vmem:[#allocation5 + $0x60] sm:$0xff]  }
  0x3b   :  { %865 = vmatprep.subr.bf16.mxu1 %v958_v6  ;;  %v965_v13 = vld [vmem:[#allocation5 + $0x18] sm:$0xff]   ;;  %v969_v17 = vld [vmem:[#allocation5 + $0x20] sm:$0xff]   ;;  %v972_v20 = vld [vmem:[#allocation5 + $0x68] sm:$0xff]  }
  0x3c   :  { %844 = vmatpush3.bf16.msra.mxu0 %v957_v5  ;;  %v966_v14 = vld [vmem:[#allocation5 + $0xd8] sm:$0xff]   ;;  %v970_v18 = vld [vmem:[#allocation5 + $0xe0] sm:$0xff]   ;;  %v973_v21 = vld [vmem:[#allocation5 + $0x28] sm:$0xff]  }
  0x3d   :  { %845 = vmatprep.subr.bf16.mxu0 %v960_v8  ;;  %v967_v15 = vld [vmem:[#allocation5 + $0x98] sm:$0xff]   ;;  %v971_v19 = vld [vmem:[#allocation5 + $0xa0] sm:$0xff]   ;;  %v974_v22 = vld [vmem:[#allocation5 + $0xe8] sm:$0xff]  }
  0x3e   :  { %866 = vmatpush3.bf16.msra.mxu1 %v959_v7  ;;  %v975_v23 = vld [vmem:[#allocation5 + $0xa8] sm:$0xff]   ;;  %v976_v24 = vld [vmem:[#allocation5 + $0x70] sm:$0xff]   ;;  %v980_v28 = vld [vmem:[#allocation5 + $0x78] sm:$0xff]  }
  0x3f   :  { %867 = vmatprep.subr.bf16.mxu1 %v962_v10  ;;  %v977_v25 = vld [vmem:[#allocation5 + $0x30] sm:$0xff]   ;;  %v981_v29 = vld [vmem:[#allocation5 + $0x38] sm:$0xff]   ;;  %v61_v34 = vld [vmem:[#allocation2] sm:$0xff] }
  0x40   :  { %846 = vmatpush3.bf16.msra.mxu0 %v961_v9  ;;  %v978_v26 = vld [vmem:[#allocation5 + $0xf0] sm:$0xff]   ;;  %v982_v30 = vld [vmem:[#allocation5 + $0xf8] sm:$0xff]   ;;  %v68_v35 = vpack.c.bf16 %v61_v34, %v61_v34  ;;  %v984_v36 = vld [vmem:[#allocation5 + $0x140] sm:$0xff]  }
  0x41   :  { %847 = vmatprep.subr.bf16.mxu0 %v964_v12  ;;  %v979_v27 = vld [vmem:[#allocation5 + $0xb0] sm:$0xff]   ;;  %v983_v33 = vld [vmem:[#allocation5 + $0xb8] sm:$0xff]   ;;  %v64_v37 = vld [vmem:[#allocation2 + $0x18] sm:$0xff] }
  0x42   :  { %868 = vmatpush3.bf16.msra.mxu1 %v963_v11  ;;  %v62_v31 = vld [vmem:[#allocation2 + $0x8] sm:$0xff]  ;;  %v71_v38 = vpack.c.bf16 %v64_v37, %v64_v37  ;;  %v985_v39 = vld [vmem:[#allocation5 + $0x100] sm:$0xff]   ;;  %v63_v40 = vld [vmem:[#allocation2 + $0x10] sm:$0xff] }
  0x43   :  { %869 = vmatprep.subr.bf16.mxu1 %v966_v14  ;;  %v69_v32 = vpack.c.bf16 %v62_v31, %v62_v31  ;;  %v70_v41 = vpack.c.bf16 %v63_v40, %v63_v40  ;;  %v986_v42 = vld [vmem:[#allocation5 + $0x148] sm:$0xff]   ;;  %v988_v45 = vld [vmem:[#allocation5 + $0x150] sm:$0xff]   ;;  %v990_v47 = vld [vmem:[#allocation5 + $0x158] sm:$0xff]  }
  0x44   :  { %848 = vmatpush3.bf16.msra.mxu0 %v965_v13  ;;  %550 = vmatprep.mubr.bf16.mxu1 %v71_v38  ;;  %v987_v43 = vld [vmem:[#allocation5 + $0x108] sm:$0xff]   ;;  %v989_v46 = vld [vmem:[#allocation5 + $0x110] sm:$0xff]   ;;  %v991_v48 = vld [vmem:[#allocation5 + $0x118] sm:$0xff]  }
  0x45   :  { %849 = vmatprep.subr.bf16.mxu0 %v968_v16  ;;  %510 = vmatprep.mubr.bf16.mxu0 %v69_v32  ;;  %v992_v49 = vld [vmem:[#allocation5 + $0x160] sm:$0xff]   ;;  %v994_v51 = vld [vmem:[#allocation5 + $0x168] sm:$0xff]   ;;  %v66_v54 = vld [vmem:[#allocation2 + $0x28] sm:$0xff] }
  0x46   :  { %870 = vmatpush3.bf16.msra.mxu1 %v967_v15  ;;  %v993_v50 = vld [vmem:[#allocation5 + $0x120] sm:$0xff]   ;;  %v995_v52 = vld [vmem:[#allocation5 + $0x128] sm:$0xff]   ;;  %v996_v55 = vld [vmem:[#allocation5 + $0x170] sm:$0xff]   ;;  %v73_v56 = vpack.c.bf16 %v66_v54, %v66_v54 }
  0x47   :  { %871 = vmatprep.subr.bf16.mxu1 %v970_v18  ;;  %v1000_v53 = vld [vmem:[#allocation5 + $0x180] sm:$0xff]   ;;  %v67_v57 = vld [vmem:[#allocation2 + $0x30] sm:$0xff]  ;;  %v997_v59 = vld [vmem:[#allocation5 + $0x130] sm:$0xff]  }
  0x48   :  { %850 = vmatpush3.bf16.msra.mxu0 %v969_v17  ;;  %v74_v58 = vpack.c.bf16 %v67_v57, %v67_v57  ;;  %v998_v60 = vld [vmem:[#allocation5 + $0x178] sm:$0xff]   ;;  %v65_v62 = vld [vmem:[#allocation2 + $0x20] sm:$0xff]  ;;  %v1002_v1 = vld [vmem:[#allocation7 + $0x8] sm:$0xff]  }
  0x49   :  { %851 = vmatprep.subr.bf16.mxu0 %v972_v20  ;;  %v999_v61 = vld [vmem:[#allocation5 + $0x138] sm:$0xff]   ;;  %v72_v63 = vpack.c.bf16 %v65_v62, %v65_v62  ;;  %v1001_v0 = vld [vmem:[#allocation7] sm:$0xff]   ;;  %v1004_v3 = vld [vmem:[#allocation7 + $0x18] sm:$0xff]  }
  0x4a   :  { %872 = vmatpush3.bf16.msra.mxu1 %v971_v19  ;;  %v1003_v2 = vld [vmem:[#allocation7 + $0x10] sm:$0xff]   ;;  %v1005_v4 = vld [vmem:[#allocation7 + $0x20] sm:$0xff]   ;;  %v1006_v5 = vld [vmem:[#allocation7 + $0x28] sm:$0xff]  }
  0x4b   :  { %873 = vmatprep.subr.bf16.mxu1 %v974_v22  ;;  %v1007_v6 = vld [vmem:[#allocation7 + $0x30] sm:$0xff]   ;;  %v1008_v7 = vld [vmem:[#allocation7 + $0x38] sm:$0xff]   ;;  %v781_v9 = vld [vmem:[%s1223_s2] ss:$0 sm:$0xff] }
  0x4c   :  { %852 = vmatpush3.bf16.msra.mxu0 %v973_v21  ;;  %v840_v34 = vld [vmem:[%s1225_s4] ss:$0 sm:$0xff]  ;;  %s1114_s4 = smov [#allocation8]  }
  0x4d   :  { %853 = vmatprep.subr.bf16.mxu0 %v976_v24  ;;  %s771_s6 = sshll.u32 %s1114_s4, 4  ;;  %s772_s6 = int_to_ptr.vmem [resolvable:$true] %s771_s6 }
  0x4e   :  { %874 = vmatpush3.bf16.msra.mxu1 %v975_v23  ;;  %s1079_s7 = scalar_lea.vmem %s772_s6, 128  ;;  %p1084_p11 = scmp.lt.s32.totalorder %s772_s6, %s772_s6 }
  0x4f   :  { %875 = vmatprep.subr.bf16.mxu1 %v978_v26  ;;  %p1080_p10 = scmp.ne.s32.totalorder %s772_s6, %s1079_s7  ;;  %p1085_p12 = scmp.lt.s32.totalorder %s1079_s7, %s1079_s7 }
  0x50   :  { %854 = vmatpush3.bf16.msra.mxu0 %v977_v25 }
  0x51   :  { %855 = vmatprep.subr.bf16.mxu0 %v980_v28  ;;  %p1086_p13 = por %p1085_p12, %p1084_p11 }
  0x52   :  { %876 = vmatpush3.bf16.msra.mxu1 %v979_v27 }
  0x53   :  { %877 = vmatprep.subr.bf16.mxu1 %v982_v30  ;;  %p1087_p0 = pnand %p1086_p13, %p1080_p10 }
  0x54   :  { %856 = vmatpush3.bf16.msra.mxu0 %v981_v29 }
  0x55   :  { %885 = vmatprep.subr.bf16.mxu0 %v984_v36 }
  0x56   :  { %878 = vmatpush3.bf16.msra.mxu1 %v983_v33 }
  0x57   :  { %511 = vmatmul.mubr.bf16.vlgmr.msra.gmra.mrb[0].mxu0 %v68_v35  ;;  %918 = vmatprep.subr.bf16.mxu1 %v1112_v44 }
  0x58   :  { %886 = vmatpush3.bf16.msra.mxu0 %v985_v39  ;;  %590 = vmatprep.mubr.bf16.mxu0 %v73_v56 }
  0x59   :  { %551 = vmatmul.mubr.bf16.vlgmr.msra.gmra.mrb[0].mxu1 %v70_v41  ;;  %887 = vmatprep.subr.bf16.mxu0 %v986_v42 }
  0x5a   :  { %920 = vmatprep.mubr.msk.bf16.mxu1 %vm1113_vm0, %v1112_v44  ;;  %919 = vmatpush3.bf16.msra.mxu1 %v1000_v53 }
  0x5b   :  { %924 = vmatprep.subr.bf16.mxu1 %v1112_v44 }
  0x5c   :  { %888 = vmatpush3.bf16.msra.mxu0 %v987_v43 }
  0x5d   :  { %889 = vmatprep.subr.bf16.mxu0 %v988_v45 }
  0x60   :  { %890 = vmatpush3.bf16.msra.mxu0 %v989_v46 }
  0x61   :  { %891 = vmatprep.subr.bf16.mxu0 %v990_v47  ;;  %921 = vmatmul.mubr.msk.bf16.vlgmr.msra.gmra.mrb[4].mxu1 %vm474_vm1, %v74_v58 }
  0x62   :  { %940 = vmatprep.mubr.msk.bf16.mxu1 %vm1113_vm0, %v1112_v44  ;;  %925 = vmatpush3.bf16.msra.mxu1 %v1001_v0 }
  0x63   :  { %926 = vmatprep.subr.bf16.mxu1 %v1112_v44 }
  0x64   :  { %892 = vmatpush3.bf16.msra.mxu0 %v991_v48 }
  0x65   :  { %893 = vmatprep.subr.bf16.mxu0 %v992_v49 }
  0x66   :  { %927 = vmatpush3.bf16.msra.mxu1 %v1002_v1 }
  0x67   :  { %928 = vmatprep.subr.bf16.mxu1 %v1112_v44 }
  0x68   :  { %894 = vmatpush3.bf16.msra.mxu0 %v993_v50 }
  0x69   :  { %895 = vmatprep.subr.bf16.mxu0 %v994_v51 }
  0x6a   :  { %929 = vmatpush3.bf16.msra.mxu1 %v1003_v2 }
  0x6b   :  { %930 = vmatprep.subr.bf16.mxu1 %v1112_v44 }
  0x6c   :  { %896 = vmatpush3.bf16.msra.mxu0 %v995_v52 }
  0x6d   :  { %897 = vmatprep.subr.bf16.mxu0 %v996_v55 }
  0x6e   :  { %931 = vmatpush3.bf16.msra.mxu1 %v1004_v3 }
  0x6f   :  { %932 = vmatprep.subr.bf16.mxu1 %v1112_v44 }
  0x70   :  { %898 = vmatpush3.bf16.msra.mxu0 %v997_v59 }
  0x71   :  { %899 = vmatprep.subr.bf16.mxu0 %v998_v60 }
  0x72   :  { %933 = vmatpush3.bf16.msra.mxu1 %v1005_v4 }
  0x73   :  { %934 = vmatprep.subr.bf16.mxu1 %v1112_v44 }
  0x74   :  { %900 = vmatpush3.bf16.msra.mxu0 %v999_v61 }
  0x76   :  { %935 = vmatpush3.bf16.msra.mxu1 %v1006_v5 }
  0x77   :  { %591 = vmatmul.mubr.bf16.vlgmr.msra.gmra.mrb[4].mxu0 %v72_v63  ;;  %936 = vmatprep.subr.bf16.mxu1 %v1112_v44 }
  0x7a   :  { %937 = vmatpush3.bf16.msra.mxu1 %v1007_v6 }
  0x7b   :  { %938 = vmatprep.subr.bf16.mxu1 %v1112_v44 }
  0x7e   :  { %939 = vmatpush3.bf16.msra.mxu1 %v1008_v7 }
 0x12a   :  { %v857_v8 = vpop.f32.mrb[0].mxu0 }
 0x12b   :  { %v858_v10 = vpop.f32.mrb[1].mxu0 }
 0x12c   :  { %v859_v11 = vadd.f32 %v858_v10, %v857_v8  ;;  %v860_v12 = vpop.f32.mrb[2].mxu0  ;;  %v879_v13 = vpop.f32.mrb[0].mxu1 }
 0x12d   :  { %v861_v14 = vpop.f32.mrb[3].mxu0  ;;  %v880_v16 = vpop.f32.mrb[1].mxu1 }
 0x12e   :  { %v513_v15 = vadd.f32 %v859_v11, %v781_v9  ;;  %v881_v17 = vadd.f32 %v880_v16, %v879_v13  ;;  %v882_v18 = vpop.f32.mrb[2].mxu1 }
 0x12f   :  { %v883_v19 = vpop.f32.mrb[3].mxu1 }
 0x130   :  { %v553_v20 = vadd.f32 %v881_v17, %v513_v15 }
 0x134   :  { %v632_v21 = vpop.f32.mrb[4].mxu1 }
 0x135   :  { %v922_v22 = vpop.f32.mrb[5].mxu1 }
 0x136   :  { %v635_v23 = vpop.f32.mrb[6].mxu1 }
 0x137   :  { %v923_v24 = vpop.f32.mrb[7].mxu1 }
 0x14a   :  { %v901_v25 = vpop.f32.mrb[4].mxu0 }
 0x14b   :  { %v902_v26 = vpop.f32.mrb[5].mxu0 }
 0x14c   :  { %v903_v27 = vadd.f32 %v902_v26, %v901_v25  ;;  %v904_v28 = vpop.f32.mrb[6].mxu0 }
 0x14d   :  { %v905_v29 = vpop.f32.mrb[7].mxu0 }
 0x14e   :  { %v593_v30 = vadd.f32 %v903_v27, %v553_v20 }
 0x150   :  { %v633_v31 = vadd.f32 %v632_v21, %v593_v30 }
 0x152   :  { %v638_v32 = vmax.f32 %v633_v31, 0.0 }
 0x154   :  { %v639_v33 = vpack.c.bf16 %v638_v32, %v638_v32 }
 0x156   :  { %941 = vmatmul.mubr.bf16.vlgmr.msra.gmra.mrb[8].mxu1 %v639_v33 }
 0x229   :  { %v738_v35 = vpop.f32.mrb[8].mxu1 }
 0x22a   :  { %v751_v36 = vadd.f32 %v840_v34, %v738_v35  ;;  %v942_v37 = vpop.f32.mrb[9].mxu1 }
 0x22b   :  { %v741_v38 = vpop.f32.mrb[10].mxu1 }
 0x22c   :  { %v943_v39 = vpop.f32.mrb[11].mxu1  ;;  %v753_v40 = vsel %vm752_vm2, %v751_v36, -inf }
 0x22d   :  { %754 = vmax.xlane.f32.xlu0 %v753_v40 }
 0x2ba   :  { %v755_v41 = vpop.xlane.xlu0 %754 }
 0x2bb   :  { %v756_v42 = vsub.f32 %v751_v36, %v755_v41 }
 0x2bd   :  { %v757_v43 = vmul.f32 1.442695, %v756_v42 }
 0x2bf   :  { %1009 = vpow2.f32 %v757_v43 }
 0x2c9   :  { %v1010_v44 = vpop.eup %1009 }
 0x2ca   :  { %v759_v45 = vsel %vm752_vm2, %v1010_v44, 0.0 }
 0x2cb   :  { %760 = vadd.xlane.f32.xlu0 %v759_v45 }
 0x358   :  { %v761_v46 = vpop.xlane.xlu0 %760 }
 0x359   :  { %1011 = vrcp.f32 %v761_v46 }
 0x363   :  { %v1012_v47 = vpop.eup %1011 }
 0x364   :  { %v763_v48 = vmul.f32 %v1012_v47, %v1010_v44 }
 0x366   :  { %764 = vst.msk [vmem:[#allocation8] sm:$0xff] %vm752_vm2, %v763_v48 }
 0x367   :  { %1090 = shalt.err (!%p1087_p0)
}
 0x368   :  { %s1091_s10 = scalar_lea.hbm %s1226_s5, 128 }
 0x369   :  { %p1092_p1 = scmp.ne.s32.totalorder %s1226_s5, %s1091_s10  ;;  %p1095_p2 = scmp.lt.u32.totalorder %s1091_s10, %s1226_s5 }
 0x36b   :  { %p1097_p3 = pnand %p1095_p2, %p1092_p1 }
 0x36d   :  { %1100 = shalt.err (!%p1097_p3)
}
 0x36e   :  { %774 = dma.vmem_to_hbm [thread:$0]  %s772_s6, 128, %s1226_s5, [#allocation4]  }
 0x36f   :  { %1105 = dma.done.wait [#allocation4], 128  }
 0x370   :  { %1106 = vsyncadd [#allocation4], 4294967168 }
 0x371   :  { %778 = vsyncpa [#allocation3], 1 }
 0x372   :  { %779 = vsyncpa [#allocation6], 1 }
 0x373   :  { %780 = vsyncpa [#allocation4], 1 }

</bundles_post_ra>
